<compile_context>
chip_gen: v7x
topology: tpu7x:2x2x1
jax: 0.10.0
libtpu: 0.0.40
codegen_flags: <defaults>
</compile_context>

<pallas_src>
import functools
import math

import jax
import jax.numpy as jnp
from jax.experimental import pallas as pl
from jax.experimental.pallas import tpu as pltpu


def _sdpa_kernel(q_ref, k_ref, v_ref, mask_ref, atten_ref, ctx_ref, *, scale):
    # Block shapes: q (1, tq, D), k/v (1, Lk, D), mask/atten (1, tq, Lk),
    # ctx (1, tq, D).
    q = q_ref[0] * scale                      # (tq, D), native dtype, scale folded in
    k = k_ref[0]                              # (Lk, D), native dtype
    v = v_ref[0]                              # (Lk, D), native dtype
    masked = mask_ref[0] != 0                 # (tq, Lk) bool, from int8 stream

    # scores = (Q * scale) @ K^T  -- contract on D, no materialized K^T,
    # native-dtype MXU operands, f32 accumulation.
    scores = jnp.einsum("qd,kd->qk", q, k,
                        preferred_element_type=jnp.float32)
    # masked_fill_(atten_mask, -1e9): exact torch semantics (fully masked
    # rows degrade to uniform 1/Lk attention, same as the reference).
    scores = jnp.where(masked, jnp.float32(-1e9), scores)

    # Numerically-stable softmax along the last (lane) axis, in f32.
    row_max = jnp.max(scores, axis=-1, keepdims=True)
    p = jnp.exp(scores - row_max)                       # EUP
    denom = jnp.sum(p, axis=-1, keepdims=True)          # XLU reduce
    # approx reciprocal (EUP slot): row sums ~1 within ~1e-3, not bit-exact.
    atten = p * pl.reciprocal(denom, approx=True)

    atten_ref[0] = atten.astype(atten_ref.dtype)

    # context = atten @ V  (MXU, probs cast to V dtype, f32 accumulation)
    ctx = jnp.einsum("qk,kd->qd", atten.astype(v.dtype), v,
                     preferred_element_type=jnp.float32)
    ctx_ref[0] = ctx.astype(ctx_ref.dtype)


def _pick_tq(Lq, Lk, tq_req):
    """Largest q tile <= request that divides Lq, is sublane-aligned, and
    keeps the (tq, Lk) f32 intermediates small enough to avoid spills."""
    cap = max(8, (128 * 2048) // max(Lk, 1))   # ~1 MiB per f32 intermediate
    tq = min(tq_req, Lq, cap)
    for cand in range(tq, 7, -1):
        if Lq % cand == 0 and cand % 8 == 0:
            return cand
    return Lq  # small / odd Lq: single q tile (full-extent block is legal)


def _vmem_limit_bytes(tq, Lq, Lk, D, q_dt, kv_dt, atten_dt, ctx_dt):
    isz = lambda dt: jnp.dtype(dt).itemsize
    per_step = (tq * D * isz(q_dt)              # Q tile
                + 2 * Lk * D * isz(kv_dt)       # K + V (resident across q tiles)
                + tq * Lk * 1                   # int8 mask tile
                + tq * Lk * isz(atten_dt)       # atten tile (write)
                + tq * D * isz(ctx_dt))         # context tile (write)
    live_f32 = 3 * tq * Lk * 4                  # scores / p / atten intermediates
    est = 2 * per_step + live_f32               # double-buffered pipeline
    # Clamp to 64 MiB so the request is valid on v7x (64 MiB physical VMEM).
    return int(min(64 * 1024 * 1024, max(32 * 1024 * 1024, 2 * est)))


def scaled_dot_product_attention(Q, K, V, atten_mask, d_k, *, tq=128):
    """Q, K, V: [B, H, L, D]; atten_mask: [B, H, Lq, Lk] (True = masked)."""
    B, H, Lq, D = Q.shape
    Lk = K.shape[2]
    BH = B * H
    scale = 1.0 / math.sqrt(d_k)
    tq = _pick_tq(Lq, Lk, tq)

    q = Q.reshape(BH, Lq, D)
    k = K.reshape(BH, Lk, D)
    v = V.reshape(BH, Lk, D)
    mask = atten_mask.reshape(BH, Lq, Lk).astype(jnp.int8)   # 1 B/elem stream

    atten_dtype = Q.dtype   # torch returns softmax in the compute dtype
    ctx_dtype = Q.dtype

    kernel = functools.partial(_sdpa_kernel, scale=scale)

    isz = lambda dt: jnp.dtype(dt).itemsize
    bytes_accessed = BH * (Lq * D * isz(q.dtype)            # Q read
                           + 2 * Lk * D * isz(k.dtype)      # K, V read
                           + Lq * Lk * 1                    # mask read (int8)
                           + Lq * Lk * isz(atten_dtype)     # atten write
                           + Lq * D * isz(ctx_dtype))       # context write
    cost = pl.CostEstimate(
        flops=4 * BH * Lq * Lk * D,            # QK^T + PV
        transcendentals=BH * Lq * Lk,          # exp
        bytes_accessed=bytes_accessed,
    )

    atten, ctx = pl.pallas_call(
        kernel,
        out_shape=(
            jax.ShapeDtypeStruct((BH, Lq, Lk), atten_dtype),
            jax.ShapeDtypeStruct((BH, Lq, D), ctx_dtype),
        ),
        grid_spec=pltpu.PrefetchScalarGridSpec(
            num_scalar_prefetch=0,
            grid=(BH, Lq // tq),
            in_specs=[
                pl.BlockSpec((1, tq, D), lambda b, i: (b, i, 0)),   # Q tile
                pl.BlockSpec((1, Lk, D), lambda b, i: (b, 0, 0)),   # full K
                pl.BlockSpec((1, Lk, D), lambda b, i: (b, 0, 0)),   # full V
                pl.BlockSpec((1, tq, Lk), lambda b, i: (b, i, 0)),  # mask tile
            ],
            out_specs=[
                pl.BlockSpec((1, tq, Lk), lambda b, i: (b, i, 0)),  # atten
                pl.BlockSpec((1, tq, D), lambda b, i: (b, i, 0)),   # context
            ],
        ),
        compiler_params=pltpu.CompilerParams(
            dimension_semantics=("parallel", "parallel"),
            vmem_limit_bytes=_vmem_limit_bytes(
                tq, Lq, Lk, D, q.dtype, k.dtype, atten_dtype, ctx_dtype),
        ),
        cost_estimate=cost,
    )(q, k, v, mask)

    return atten.reshape(B, H, Lq, Lk), ctx.reshape(B, H, Lq, D)


class ScaledDotProductAttentionPallas:
    """Pallas mirror of the PyTorch ScaledDotProductAttention module."""

    def __init__(self, d_k):
        self.d_k = d_k

    def forward(self, Q, K, V, atten_mask):
        # No host sync here; callers/benchmarks decide when to block.
        return scaled_dot_product_attention(Q, K, V, atten_mask, self.d_k)

    __call__ = forward


def _sdpa_reference(Q, K, V, atten_mask, d_k):
    scores = jnp.einsum("bhqd,bhkd->bhqk", Q, K,
                        preferred_element_type=jnp.float32) / math.sqrt(d_k)
    scores = jnp.where(atten_mask, jnp.float32(-1e9), scores)
    atten = jax.nn.softmax(scores, axis=-1)
    ctx = jnp.einsum("bhqk,bhkd->bhqd", atten, V.astype(jnp.float32))
    return atten.astype(Q.dtype), ctx.astype(Q.dtype)


if __name__ == "__main__":
    key = jax.random.PRNGKey(0)
    batch, heads, seq, d_k = 2, 2, 128, 64
    kq, kk, kv = jax.random.split(key, 3)

    Q = jax.random.normal(kq, (batch, heads, seq, d_k), dtype=jnp.float32)
    K = jax.random.normal(kk, (batch, heads, seq, d_k), dtype=jnp.float32)
    V = jax.random.normal(kv, (batch, heads, seq, d_k), dtype=jnp.float32)
    # Causal mask (True = masked), broadcast to [B, H, Lq, Lk].
    causal = jnp.triu(jnp.ones((seq, seq), dtype=jnp.bool_), k=1)
    atten_mask = jnp.broadcast_to(causal, (batch, heads, seq, seq))

    model = ScaledDotProductAttentionPallas(d_k)
    atten, context = model(Q, K, V, atten_mask)
    jax.block_until_ready((atten, context))

    atten_ref, context_ref = _sdpa_reference(Q, K, V, atten_mask, d_k)

    assert atten.shape == (batch, heads, seq, seq)
    assert context.shape == (batch, heads, seq, d_k)
    assert bool(jnp.allclose(atten, atten_ref, rtol=2e-2, atol=2e-3)), "atten mismatch"
    assert bool(jnp.allclose(context, context_ref, rtol=2e-2, atol=2e-3)), "context mismatch"
    # Softmax rows should sum to ~1 (approx reciprocal -> ~1e-3 tolerance).
    assert bool(jnp.allclose(jnp.sum(atten.astype(jnp.float32), axis=-1),
                             1.0, rtol=5e-3, atol=5e-3))

    print("KERNEL_OK")
</pallas_src>

<mosaic_0001>
module attributes {stable_mosaic.version = 11 : i64} {
  func.func @_sdpa_kernel(%arg0: i32, %arg1: i32, %arg2: memref<1x128x64xf32, #tpu.memory_space<vmem>>, %arg3: memref<1x128x64xf32, #tpu.memory_space<vmem>>, %arg4: memref<1x128x64xf32, #tpu.memory_space<vmem>>, %arg5: memref<1x128x128xi8, #tpu.memory_space<vmem>>, %arg6: memref<1x128x128xf32, #tpu.memory_space<vmem>>, %arg7: memref<1x128x64xf32, #tpu.memory_space<vmem>>) attributes {dimension_semantics = [#tpu.dimension_semantics<parallel>, #tpu.dimension_semantics<parallel>], iteration_bounds = array<i64: 4, 1>, scalar_prefetch = 0 : i64, scratch_operands = 0 : i64, tpu.core_type = #tpu.core_type<tc>, window_params = [{transform_indices = @transform_0, window_bounds = array<i64: 1, 128, 64>}, {transform_indices = @transform_1, window_bounds = array<i64: 1, 128, 64>}, {transform_indices = @transform_2, window_bounds = array<i64: 1, 128, 64>}, {transform_indices = @transform_3, window_bounds = array<i64: 1, 128, 128>}, {transform_indices = @transform_4, window_bounds = array<i64: 1, 128, 128>}, {transform_indices = @transform_5, window_bounds = array<i64: 1, 128, 64>}]} {
    %c0 = arith.constant 0 : index
    %c0_0 = arith.constant 0 : index
    %c0_1 = arith.constant 0 : index
    %0 = vector.load %arg2[%c0, %c0_0, %c0_1] : memref<1x128x64xf32, #tpu.memory_space<vmem>>, vector<1x128x64xf32>
    %1 = vector.shape_cast %0 : vector<1x128x64xf32> to vector<128x64xf32>
    %cst = arith.constant 1.250000e-01 : f32
    %2 = vector.broadcast %cst : f32 to vector<128x64xf32>
    %3 = arith.mulf %1, %2 : vector<128x64xf32>
    %c0_2 = arith.constant 0 : index
    %c0_3 = arith.constant 0 : index
    %c0_4 = arith.constant 0 : index
    %4 = vector.load %arg3[%c0_2, %c0_3, %c0_4] : memref<1x128x64xf32, #tpu.memory_space<vmem>>, vector<1x128x64xf32>
    %5 = vector.shape_cast %4 : vector<1x128x64xf32> to vector<128x64xf32>
    %c0_5 = arith.constant 0 : index
    %c0_6 = arith.constant 0 : index
    %c0_7 = arith.constant 0 : index
    %6 = vector.load %arg4[%c0_5, %c0_6, %c0_7] : memref<1x128x64xf32, #tpu.memory_space<vmem>>, vector<1x128x64xf32>
    %7 = vector.shape_cast %6 : vector<1x128x64xf32> to vector<128x64xf32>
    %c0_8 = arith.constant 0 : index
    %c0_9 = arith.constant 0 : index
    %c0_10 = arith.constant 0 : index
    %8 = vector.load %arg5[%c0_8, %c0_9, %c0_10] : memref<1x128x128xi8, #tpu.memory_space<vmem>>, vector<1x128x128xi8>
    %9 = vector.shape_cast %8 : vector<1x128x128xi8> to vector<128x128xi8>
    %c0_i8 = arith.constant 0 : i8
    %10 = vector.broadcast %c0_i8 : i8 to vector<128x128xi8>
    %11 = arith.cmpi ne, %9, %10 : vector<128x128xi8>
    "tpu.trace_start"() <{level = 10 : i32, message = "qd,kd->qk"}> : () -> ()
    %cst_11 = arith.constant dense<0.000000e+00> : vector<128x128xf32>
    %12 = tpu.matmul %3, %5, %cst_11 {dimension_numbers = #tpu.dot_dimension_numbers<[1], [1], [0], [0], [0, 0, 1, 0], [], []>} : vector<128x64xf32>, vector<128x64xf32>, vector<128x128xf32> -> vector<128x128xf32>
    %cst_12 = arith.constant -1.000000e+09 : f32
    "tpu.trace_stop"() : () -> ()
    %13 = vector.broadcast %cst_12 : f32 to vector<128x128xf32>
    %14 = arith.select %11, %13, %12 : vector<128x128xi1>, vector<128x128xf32>
    %cst_13 = arith.constant dense<0xFF800000> : vector<128xf32>
    %15 = vector.multi_reduction <maximumf>, %14, %cst_13 [1] : vector<128x128xf32> to vector<128xf32>
    %16 = vector.shape_cast %15 : vector<128xf32> to vector<128x1xf32>
    %17 = vector.broadcast %16 : vector<128x1xf32> to vector<128x128xf32>
    %18 = arith.subf %14, %17 : vector<128x128xf32>
    %19 = math.exp %18 : vector<128x128xf32>
    %cst_14 = arith.constant dense<0.000000e+00> : vector<128xf32>
    %20 = vector.multi_reduction <add>, %19, %cst_14 [1] : vector<128x128xf32> to vector<128xf32>
    %21 = vector.shape_cast %20 : vector<128xf32> to vector<128x1xf32>
    %22 = tpu.reciprocal %21 {approx = true} : vector<128x1xf32> -> vector<128x1xf32>
    %23 = vector.broadcast %22 : vector<128x1xf32> to vector<128x128xf32>
    %24 = arith.mulf %19, %23 : vector<128x128xf32>
    %c0_15 = arith.constant 0 : index
    %c0_16 = arith.constant 0 : index
    %c0_17 = arith.constant 0 : index
    %25 = vector.load %arg6[%c0_15, %c0_16, %c0_17] : memref<1x128x128xf32, #tpu.memory_space<vmem>>, vector<1x128x128xf32>
    %26 = vector.shape_cast %25 : vector<1x128x128xf32> to vector<128x128xf32>
    %27 = vector.shape_cast %24 : vector<128x128xf32> to vector<1x128x128xf32>
    tpu.vector_store %arg6[%c0_15, %c0_16, %c0_17], %27 {strides = array<i32>} : memref<1x128x128xf32, #tpu.memory_space<vmem>>, vector<1x128x128xf32>,
    "tpu.trace_start"() <{level = 10 : i32, message = "qk,kd->qd"}> : () -> ()
    %cst_18 = arith.constant dense<0.000000e+00> : vector<128x64xf32>
    %28 = tpu.matmul %24, %7, %cst_18 {dimension_numbers = #tpu.dot_dimension_numbers<[1], [0], [0], [1], [0, 0, 1, 1], [], []>} : vector<128x128xf32>, vector<128x64xf32>, vector<128x64xf32> -> vector<128x64xf32>
    "tpu.trace_stop"() : () -> ()
    %c0_19 = arith.constant 0 : index
    %c0_20 = arith.constant 0 : index
    %c0_21 = arith.constant 0 : index
    %29 = vector.load %arg7[%c0_19, %c0_20, %c0_21] : memref<1x128x64xf32, #tpu.memory_space<vmem>>, vector<1x128x64xf32>
    %30 = vector.shape_cast %29 : vector<1x128x64xf32> to vector<128x64xf32>
    %31 = vector.shape_cast %28 : vector<128x64xf32> to vector<1x128x64xf32>
    tpu.vector_store %arg7[%c0_19, %c0_20, %c0_21], %31 {strides = array<i32>} : memref<1x128x64xf32, #tpu.memory_space<vmem>>, vector<1x128x64xf32>,
    return
  }
  func.func @transform_0(%arg0: i32, %arg1: i32) -> (i32, i32, i32) {
    %c0_i32 = arith.constant 0 : i32
    %c0_i32_0 = arith.constant 0 : i32
    return %arg0, %arg1, %c0_i32 : i32, i32, i32
  }
  func.func @transform_1(%arg0: i32, %arg1: i32) -> (i32, i32, i32) {
    %c0_i32 = arith.constant 0 : i32
    %c0_i32_0 = arith.constant 0 : i32
    %c0_i32_1 = arith.constant 0 : i32
    return %arg0, %c0_i32, %c0_i32_0 : i32, i32, i32
  }
  func.func @transform_2(%arg0: i32, %arg1: i32) -> (i32, i32, i32) {
    %c0_i32 = arith.constant 0 : i32
    %c0_i32_0 = arith.constant 0 : i32
    %c0_i32_1 = arith.constant 0 : i32
    return %arg0, %c0_i32, %c0_i32_0 : i32, i32, i32
  }
  func.func @transform_3(%arg0: i32, %arg1: i32) -> (i32, i32, i32) {
    %c0_i32 = arith.constant 0 : i32
    %c0_i32_0 = arith.constant 0 : i32
    return %arg0, %arg1, %c0_i32 : i32, i32, i32
  }
  func.func @transform_4(%arg0: i32, %arg1: i32) -> (i32, i32, i32) {
    %c0_i32 = arith.constant 0 : i32
    %c0_i32_0 = arith.constant 0 : i32
    return %arg0, %arg1, %c0_i32 : i32, i32, i32
  }
  func.func @transform_5(%arg0: i32, %arg1: i32) -> (i32, i32, i32) {
    %c0_i32 = arith.constant 0 : i32
    %c0_i32_0 = arith.constant 0 : i32
    return %arg0, %arg1, %c0_i32 : i32, i32, i32
  }
}

</mosaic_0001>

<bundles_post_ra>
// kernel: tpu_custom_call.1
= control target key start
LH: loop header
LB: loop body
LE: loop exit
PB: predicated region body
PF: predicated region fallthrough
CT: control target
= control target key end

     0   :  { %11 = vsyncpa [#allocation3], 0  ;;  %s2371_s0 = inlined_call_operand.vmem [shape: f32[4,128,64], index: 0, kind: input, shape index: {}]   ;;  %s2372_s1 = inlined_call_operand.vmem [shape: f32[4,128,64], index: 1, kind: input, shape index: {}]   ;;  %s2373_s2 = inlined_call_operand.vmem [shape: f32[4,128,64], index: 2, kind: input, shape index: {}]   ;;  %s2374_s3 = inlined_call_operand.vmem [shape: s8[4,128,128], index: 3, kind: input, shape index: {}]   ;;  %s2375_s4 = inlined_call_operand.hbm [shape: f32[4,128,128], index: 4, kind: output, shape index: {0}]   ;;  %s2376_s5 = inlined_call_operand.vmem [shape: f32[4,128,64], index: 5, kind: output, shape index: {1}]  }
   0x1   :  { %13 = vsyncpa [#allocation3 + $0x1], 0  ;;  %s1861_s18 = smov 0   ;;  %s1863_s19 = smov 0  }
   0x2   :  { %s1865_s20 = smov 0   ;;  %s1867_s21 = smov 0  }
   0x3   :  { %s1869_s22 = smov 0   ;;  %s1871_s23 = smov 0  }
   0x4 LB: > { %s1310_s24 = sadd.s32 4294967295, %s1825_s23   ;;  %s1311_s25 = sadd.s32 4294967294, %s1825_s23   ;;  %s1825_s23 = sphi %s1871_s23, %s19_s23   ;;  %s1821_s22 = sphi %s1869_s22, %s2401_s22   ;;  %s1817_s21 = sphi %s1867_s21, %s2400_s21   ;;  %s1813_s20 = sphi %s1865_s20, %s2399_s20   ;;  %s1809_s19 = sphi %s1863_s19, %s2398_s19   ;;  %s1805_s18 = sphi %s1861_s18, %s2397_s18  }
   0x5   : > { %s31_s26 = sadd.s32 1, %s1821_s22  ;;  %s148_s27 = sadd.s32 1, %s1813_s20 }
   0x6   : > { %p33_p0 = scmp.ge.s32.totalorder %s31_s26, 4  ;;  %p158_p1 = scmp.ne.s32.totalorder %s1813_s20, %s1809_s19 }
   0x7   : > { %p159_p2 = scmp.eq.s32.totalorder %s1310_s24, 3  ;;  %p164_p3 = scmp.ne.s32.totalorder %s1809_s19, %s1805_s18 }
   0x8   : > { %s2403_s26 = smov (%p33_p0, %s31_s26), 0  ;;  %p165_p5 = scmp.eq.s32.totalorder %s1311_s25, 3 }
   0x9   : > { %p1901_p4 = por %p159_p2, %p158_p1  ;;  %s143_s29 = ssub.s32 %s1821_s22, %s2403_s26 }
   0xa   : > { %p1314_p6 = scmp.ge.s32.totalorder %s1825_s23, 1  ;;  %p146_p7 = scmp.eq.s32.totalorder %s143_s29, 0 }
   0xb   : > { %p1908_p8 = por %p165_p5, %p164_p3  ;;  %p253_p9 = scmp.lt.s32.totalorder %s1825_s23, 5 }
   0xc   : > { %s1914_s6 = scalar_select %p146_p7, %s1813_s20, %s148_s27  }
   0xd   : > { %p254_p10 = pnand %p1314_p6, %p253_p9 }
   0xe   : > { %p314_p11 = scmp.lt.s32.totalorder (!%p254_p10), %s1817_s21, 3  ;;  %vm428_vm0 = vcmask (!%p254_p10), 523264   ;;  %v1827_v58 = vmov (!%p254_p10), 0  }
   0xf   : > { %257 = sbr.rel (%p254_p10) target bundleno = 865 (0x361), region = 36  ;;  %vm1931_vm1 = vmpackc.low (!%p254_p10), %vm428_vm0, %vm428_vm0 }
  0x16   : > { %s1918_s7 = scalar_select %p314_p11, %s1817_s21, 3 }
  0x18   : > { %s1921_s8 = sshll.u32 %s1918_s7, 7  ;;  %s1366_s15 = sshll.u32 %s1918_s7, 5 }
  0x19   : > { %s1927_s11 = scalar_lea.vmem %s2372_s1, %s1921_s8  ;;  %s1943_s14 = scalar_lea.vmem %s2371_s0, %s1921_s8 }
  0x1a   : > { %v388_v1 = vld [vmem:[%s1927_s11] sm:$0xff]  ;;  %v389_v2 = vld [vmem:[%s1927_s11 + $0x8] sm:$0xff]  ;;  %v390_v3 = vld [vmem:[%s1927_s11 + $0x10] sm:$0xff]  ;;  %s2025_s24 = scalar_lea.vmem %s2374_s3, %s1366_s15  ;;  %s2157_s29 = scalar_lea.vmem %s2373_s2, %s1921_s8 }
  0x1b   : > { %v1545_v4 = vpack.c.bf16 %v389_v2, %v388_v1  ;;  %v391_v5 = vld [vmem:[%s1927_s11 + $0x18] sm:$0xff]  ;;  %v356_v7 = vld [vmem:[%s1943_s14] sm:$0xff]  ;;  %v393_v9 = vld [vmem:[%s1927_s11 + $0x28] sm:$0xff]  ;;  %s299_s7 = sand.u32 1, %s1809_s19  }
  0x1c   : > { %v1551_v6 = vpack.c.bf16 %v391_v5, %v390_v3  ;;  %v392_v8 = vld [vmem:[%s1927_s11 + $0x20] sm:$0xff]  ;;  %v372_v10 = vmul.f32 0.125, %v356_v7  ;;  %v394_v12 = vld [vmem:[%s1927_s11 + $0x30] sm:$0xff]  ;;  %v395_v13 = vld [vmem:[%s1927_s11 + $0x38] sm:$0xff]  ;;  %s1315_s9 = sshll.u32 %s299_s7, 7  ;;  %s2287_s16 = scalar_lea.sflag [#allocation3], %s299_s7 }
  0x1d   : > { %1547 = vmatprep.subr.msk.bf16.mxu0 %vm1931_vm1, %v1545_v4  ;;  %v1557_v11 = vpack.c.bf16 %v393_v9, %v392_v8  ;;  %v1563_v14 = vpack.c.bf16 %v395_v13, %v394_v12  ;;  %v396_v15 = vld [vmem:[%s1927_s11 + $0x40] sm:$0xff]  ;;  %v397_v16 = vld [vmem:[%s1927_s11 + $0x48] sm:$0xff]  ;;  %v398_v18 = vld [vmem:[%s1927_s11 + $0x50] sm:$0xff]  ;;  %s2243_s10 = scalar_lea.vmem [#allocation2], %s1315_s9 }
  0x1e   : > { %1550 = vmatpush3.bf16.xpose.msk.msra.mxu0 %vm1931_vm1, %v1545_v4  ;;  %1465 = vmatprep.mubr.msk.f32.mxu0 %vm428_vm0, %v372_v10  ;;  %v1569_v17 = vpack.c.bf16 %v397_v16, %v396_v15  ;;  %v399_v19 = vld [vmem:[%s1927_s11 + $0x58] sm:$0xff]  ;;  %v400_v21 = vld [vmem:[%s1927_s11 + $0x60] sm:$0xff]  ;;  %v401_v22 = vld [vmem:[%s1927_s11 + $0x68] sm:$0xff]  ;;  %s1148_s12 = sshll.u32 %s2243_s10, 4  ;;  %s2283_s12 = int_to_ptr.vmem [resolvable:$true] %s1148_s12 }
  0x1f   : > { %1553 = vmatprep.subr.msk.bf16.mxu0 %vm1931_vm1, %v1551_v6  ;;  %v1575_v20 = vpack.c.bf16 %v399_v19, %v398_v18  ;;  %v1581_v23 = vpack.c.bf16 %v401_v22, %v400_v21  ;;  %v402_v24 = vld [vmem:[%s1927_s11 + $0x70] sm:$0xff]  ;;  %v403_v25 = vld [vmem:[%s1927_s11 + $0x78] sm:$0xff]  ;;  %v357_v27 = vld [vmem:[%s1943_s14 + $0x8] sm:$0xff]  ;;  %s1368_s11 = sshll.u32 %s1817_s21, 11  ;;  %s1747_s17 = scalar_lea.vmem %s2283_s12, 2048 }
  0x20   : > { %v1587_v26 = vpack.c.bf16 %v403_v25, %v402_v24  ;;  %v358_v28 = vld [vmem:[%s1943_s14 + $0x10] sm:$0xff]  ;;  %v373_v29 = vmul.f32 0.125, %v357_v27  ;;  %v359_v31 = vld [vmem:[%s1943_s14 + $0x18] sm:$0xff]  ;;  %v360_v32 = vld [vmem:[%s1943_s14 + $0x20] sm:$0xff]  ;;  %s2281_s15 = scalar_lea.hbm %s2375_s4, %s1368_s11  ;;  %p1748_p12 = scmp.ne.s32.totalorder %s2283_s12, %s1747_s17 }
  0x21   : > { %v374_v30 = vmul.f32 0.125, %v358_v28  ;;  %v375_v33 = vmul.f32 0.125, %v359_v31  ;;  %v376_v34 = vmul.f32 0.125, %v360_v32  ;;  %v361_v35 = vld [vmem:[%s1943_s14 + $0x28] sm:$0xff]  ;;  %v362_v36 = vld [vmem:[%s1943_s14 + $0x30] sm:$0xff]  ;;  %v363_v39 = vld [vmem:[%s1943_s14 + $0x38] sm:$0xff] }
  0x22   : > { %v377_v37 = vmul.f32 0.125, %v361_v35  ;;  %v378_v38 = vmul.f32 0.125, %v362_v36  ;;  %v364_v40 = vld [vmem:[%s1943_s14 + $0x40] sm:$0xff]  ;;  %v379_v41 = vmul.f32 0.125, %v363_v39  ;;  %v365_v43 = vld [vmem:[%s1943_s14 + $0x48] sm:$0xff]  ;;  %v366_v44 = vld [vmem:[%s1943_s14 + $0x50] sm:$0xff]  ;;  %p1749_p13 = pnand %p1748_p12, %p1901_p4 }
  0x23   : > { %v380_v42 = vmul.f32 0.125, %v364_v40  ;;  %v381_v45 = vmul.f32 0.125, %v365_v43  ;;  %v382_v46 = vmul.f32 0.125, %v366_v44  ;;  %v367_v47 = vld [vmem:[%s1943_s14 + $0x58] sm:$0xff]  ;;  %v368_v48 = vld [vmem:[%s1943_s14 + $0x60] sm:$0xff]  ;;  %v369_v51 = vld [vmem:[%s1943_s14 + $0x68] sm:$0xff] }
  0x24   : > { %v383_v49 = vmul.f32 0.125, %v367_v47  ;;  %v384_v50 = vmul.f32 0.125, %v368_v48  ;;  %v370_v52 = vld [vmem:[%s1943_s14 + $0x70] sm:$0xff]  ;;  %v385_v53 = vmul.f32 0.125, %v369_v51  ;;  %v371_v55 = vld [vmem:[%s1943_s14 + $0x78] sm:$0xff]  ;;  %v420_v57 = vld [vmem:[%s2025_s24] sm:$0xff]  ;;  %p1750_p0 = pneg %p1749_p13 }
  0x25   : > { %v386_v54 = vmul.f32 0.125, %v370_v52  ;;  %v387_v56 = vmul.f32 0.125, %v371_v55  ;;  %vm424_vm2 = vnez %v420_v57  ;;  %v421_v60 = vld [vmem:[%s2025_s24 + $0x8] sm:$0xff]  ;;  %v422_v7 = vld [vmem:[%s2025_s24 + $0x10] sm:$0xff]  ;;  %v423_v21 = vld [vmem:[%s2025_s24 + $0x18] sm:$0xff]  ;;  %s1828_s21 = smov [#allocation2]  }
  0x26   : > { %1556 = vmatpush3.bf16.xpose.msk.msra.mxu0 %vm1931_vm1, %v1551_v6  ;;  %v670_v59 = vsel %vm424_vm2, 16843009, %v1827_v58  ;;  %vm425_vm3 = vnez %v421_v60  ;;  %vm426_vm4 = vnez %v422_v7  ;;  %vm427_vm9 = vnez %v423_v21  ;;  %s1751_s24 = sshll.u32 %s1828_s21, 4  ;;  %s1752_s24 = int_to_ptr.vmem [resolvable:$false] %s1751_s24 }
  0x27   : > { %1559 = vmatprep.subr.msk.bf16.mxu0 %vm1931_vm1, %v1557_v11  ;;  %v674_v61 = vunpack.c.0.s8 %v670_v59  ;;  %v675_v62 = vunpack.c.1.s8 %v670_v59  ;;  %v676_v0 = vunpack.c.2.s8 %v670_v59  ;;  %v671_v1 = vsel %vm425_vm3, 16843009, %v1827_v58  ;;  %s1753_s25 = scalar_lea.vmem %s1752_s24, 4096  ;;  %p1754_p1 = scmp.lt.s32.totalorder %s2283_s12, %s1752_s24 }
  0x28   : > { %v677_v2 = vunpack.c.3.s8 %v670_v59  ;;  %v678_v6 = vunpack.c.0.s8 %v671_v1  ;;  %v679_v10 = vunpack.c.1.s8 %v671_v1  ;;  %v672_v15 = vsel %vm426_vm4, 16843009, %v1827_v58  ;;  %p1755_p2 = scmp.lt.s32.totalorder %s1753_s25, %s1747_s17 }
  0x29   : > { %v690_v63 = vpack.c.b16 %v674_v61, %v674_v61  ;;  %v692_v3 = vpack.c.b16 %v675_v62, %v675_v62  ;;  %v694_v5 = vpack.c.b16 %v676_v0, %v676_v0  ;;  %v682_v22 = vunpack.c.0.s8 %v672_v15 }
  0x2a   : > { %v696_v8 = vpack.c.b16 %v677_v2, %v677_v2  ;;  %v698_v13 = vpack.c.b16 %v678_v6, %v678_v6  ;;  %v2043_v35 = vsel %vm427_vm9, 16843009, %v1827_v58  ;;  %v685_v44 = vunpack.c.3.s8 %v672_v15  ;;  %v407_v2 = vld [vmem:[%s2157_s29 + $0x18] sm:$0xff]  ;;  %p1756_p3 = por %p1755_p2, %p1754_p1 }
  0x2b   : > { %v691_v4 = vpack.c.b8 %v690_v63, %v690_v63  ;;  %v693_v9 = vpack.c.b8 %v692_v3, %v692_v3  ;;  %v695_v12 = vpack.c.b8 %v694_v5, %v694_v5  ;;  %v706_v31 = vpack.c.b16 %v682_v22, %v682_v22 }
  0x2c   : > { %v699_v19 = vpack.c.b8 %v698_v13, %v698_v13  ;;  %v686_v47 = vunpack.c.0.s8 %v2043_v35  ;;  %v712_v59 = vpack.c.b16 %v685_v44, %v685_v44  ;;  %v687_v62 = vunpack.c.1.s8 %v2043_v35  ;;  %p1757_p5 = pnand %p1756_p3, %p1750_p0 }
  0x2d   : > { %vm722_vm5 = vnez %v691_v4  ;;  %vm723_vm6 = vnez %v693_v9  ;;  %vm724_vm7 = vnez %v695_v12  ;;  %v688_v63 = vunpack.c.2.s8 %v2043_v35 }
  0x2e   : > { %1562 = vmatpush3.bf16.xpose.msk.msra.mxu0 %vm1931_vm1, %v1557_v11  ;;  %v680_v11 = vunpack.c.2.s8 %v671_v1  ;;  %v738_v16 = vsel %vm722_vm5, 16843009, %v1827_v58  ;;  %v739_v24 = vsel %vm723_vm6, 16843009, %v1827_v58  ;;  %v740_v25 = vsel %vm724_vm7, 16843009, %v1827_v58 }
  0x2f   : > { %1565 = vmatprep.subr.msk.bf16.mxu0 %vm1931_vm1, %v1563_v14  ;;  %vm726_vm10 = vnez %v699_v19  ;;  %v756_v36 = vunpack.c.0.s8 %v740_v25  ;;  %v714_v61 = vpack.c.b16 %v686_v47, %v686_v47  ;;  %v716_v13 = vpack.c.b16 %v687_v62, %v687_v62  ;;  %v406_v62 = vld [vmem:[%s2157_s29 + $0x10] sm:$0xff] }
  0x30   : > { %v702_v18 = vpack.c.b16 %v680_v11, %v680_v11 }
  0x31   : > { %vm772_vm15 = vcmp.ne.s32.totalorder %v756_v36, 0  ;;  %v715_v12 = vpack.c.b8 %v714_v61, %v714_v61  ;;  %v405_v61 = vld [vmem:[%s2157_s29 + $0x8] sm:$0xff] }
  0x32   : > { %v703_v27 = vpack.c.b8 %v702_v18, %v702_v18 }
  0x34   : > { %vm2050_vm13 = vnez %v703_v27 }
  0x36   : > { %1568 = vmatpush3.bf16.xpose.msk.msra.mxu0 %vm1931_vm1, %v1563_v14  ;;  %v697_v14 = vpack.c.b8 %v696_v8, %v696_v8  ;;  %v411_v8 = vld [vmem:[%s2157_s29 + $0x38] sm:$0xff] }
  0x37   : > { %1571 = vmatprep.subr.msk.bf16.mxu0 %vm1931_vm1, %v1569_v17 }
  0x38   : > { %vm725_vm8 = vnez %v697_v14  ;;  %v718_v14 = vpack.c.b16 %v688_v63, %v688_v63 }
  0x3a   : > { %v719_v25 = vpack.c.b8 %v718_v14, %v718_v14 }
  0x3e   : > { %1574 = vmatpush3.bf16.xpose.msk.msra.mxu0 %vm1931_vm1, %v1569_v17  ;;  %v700_v17 = vpack.c.b16 %v679_v10, %v679_v10  ;;  %v713_v10 = vpack.c.b8 %v712_v59, %v712_v59 }
  0x3f   : > { %1577 = vmatprep.subr.msk.bf16.mxu0 %vm1931_vm1, %v1575_v20 }
  0x40   : > { %vm733_vm9 = vnez %v713_v10 }
  0x41   : > { %v749_v32 = vsel %vm733_vm9, 16843009, %v1827_v58 }
  0x46   : > { %1580 = vmatpush3.bf16.xpose.msk.msra.mxu0 %vm1931_vm1, %v1575_v20  ;;  %v681_v20 = vunpack.c.3.s8 %v671_v1 }
  0x47   : > { %1583 = vmatprep.subr.msk.bf16.mxu0 %vm1931_vm1, %v1581_v23 }
  0x48   : > { %v704_v28 = vpack.c.b16 %v681_v20, %v681_v20 }
  0x4e   : > { %1586 = vmatpush3.bf16.xpose.msk.msra.mxu0 %vm1931_vm1, %v1581_v23  ;;  %v754_v23 = vunpack.c.0.s8 %v738_v16 }
  0x4f   : > { %1589 = vmatprep.subr.msk.bf16.mxu0 %vm1931_vm1, %v1587_v26 }
  0x50   : > { %vm2037_vm11 = vcmp.ne.s32.totalorder %v754_v23, 0 }
  0x56   : > { %1592 = vmatpush3.bf16.xpose.msk.msra.mxu0 %vm1931_vm1, %v1587_v26  ;;  %v701_v26 = vpack.c.b8 %v700_v17, %v700_v17 }
  0x58   : > { %vm2046_vm12 = vnez %v701_v26 }
  0x59   : > { %v743_v52 = vsel %vm2046_vm12, 16843009, %v1827_v58 }
  0x5a   : > { %v759_v3 = vunpack.c.0.s8 %v743_v52 }
  0x5c   : > { %vm775_vm7 = vcmp.ne.s32.totalorder %v759_v3, 0  ;;  %v1597_v3 = vpack.c.bf16 %v407_v2, %v406_v62  ;;  %v413_v62 = vld [vmem:[%s2157_s29 + $0x48] sm:$0xff] }
  0x5d   : > { %1466 = vmatmul.mubr.msk.f32.vlgmr.msra.gmra.mrb[0].mxu0 %vm428_vm0, %v373_v29  ;;  %v683_v29 = vunpack.c.1.s8 %v672_v15 }
  0x5e   : > { %1468 = vmatprep.mubr.msk.f32.mxu0 %vm428_vm0, %v374_v30  ;;  %v684_v30 = vunpack.c.2.s8 %v672_v15  ;;  %v689_v15 = vunpack.c.3.s8 %v2043_v35 }
  0x60   : > { %v710_v43 = vpack.c.b16 %v684_v30, %v684_v30  ;;  %v720_v26 = vpack.c.b16 %v689_v15, %v689_v15 }
  0x61   : > { %1469 = vmatmul.mubr.msk.f32.gmra.mrb[2].mxu0 %vm428_vm0, %v375_v33  ;;  %v755_v33 = vunpack.c.0.s8 %v739_v24  ;;  %v717_v24 = vpack.c.b8 %v716_v13, %v716_v13 }
  0x62   : > { %1471 = vmatprep.mubr.msk.f32.mxu0 %vm428_vm0, %v376_v34  ;;  %v741_v34 = vsel %vm725_vm8, 16843009, %v1827_v58  ;;  %v711_v57 = vpack.c.b8 %v710_v43, %v710_v43  ;;  %v721_v35 = vpack.c.b8 %v720_v26, %v720_v26 }
  0x63   : > { %vm2059_vm14 = vcmp.ne.s32.totalorder %v755_v33, 0 }
  0x64   : > { %vm2096_vm6 = vnez %v711_v57 }
  0x65   : > { %1472 = vmatmul.mubr.msk.f32.gmra.mrb[4].mxu0 %vm428_vm0, %v377_v37  ;;  %v742_v37 = vsel %vm726_vm10, 16843009, %v1827_v58  ;;  %v748_v22 = vsel %vm2096_vm6, 16843009, %v1827_v58  ;;  %vm734_vm10 = vnez %v715_v12 }
  0x66   : > { %1474 = vmatprep.mubr.msk.f32.mxu0 %vm428_vm0, %v378_v38  ;;  %v758_v51 = vunpack.c.0.s8 %v742_v37  ;;  %v764_v30 = vunpack.c.0.s8 %v748_v22  ;;  %v750_v33 = vsel %vm734_vm10, 16843009, %v1827_v58  ;;  %v765_v38 = vunpack.c.0.s8 %v749_v32 }
  0x67   : > { %v766_v39 = vunpack.c.0.s8 %v750_v33 }
  0x68   : > { %vm774_vm4 = vcmp.ne.s32.totalorder %v758_v51, 0 }
  0x69   : > { %1475 = vmatmul.mubr.msk.f32.gmra.mrb[6].mxu0 %vm428_vm0, %v379_v41  ;;  %v705_v41 = vpack.c.b8 %v704_v28, %v704_v28 }
  0x6a   : > { %1477 = vmatprep.mubr.msk.f32.mxu0 %vm428_vm0, %v380_v42  ;;  %v708_v42 = vpack.c.b16 %v683_v29, %v683_v29 }
  0x6b   : > { %vm2070_vm1 = vnez %v705_v41 }
  0x6c   : > { %v745_v5 = vsel %vm2070_vm1, 16843009, %v1827_v58  ;;  %vm780_vm1 = vcmp.ne.s32.totalorder %v764_v30, 0 }
  0x6d   : > { %1478 = vmatmul.mubr.msk.f32.gmra.mrb[8].mxu0 %vm428_vm0, %v381_v45  ;;  %v761_v18 = vunpack.c.0.s8 %v745_v5  ;;  %v409_v5 = vld [vmem:[%s2157_s29 + $0x28] sm:$0xff] }
  0x6e   : > { %1480 = vmatprep.mubr.msk.f32.mxu0 %vm428_vm0, %v382_v46  ;;  %v707_v46 = vpack.c.b8 %v706_v31, %v706_v31 }
  0x70   : > { %vm730_vm2 = vnez %v707_v46 }
  0x71   : > { %1481 = vmatmul.mubr.msk.f32.gmra.mrb[10].mxu0 %vm428_vm0, %v383_v49  ;;  %v746_v7 = vsel %vm730_vm2, 16843009, %v1827_v58  ;;  %vm737_vm2 = vnez %v721_v35 }
  0x72   : > { %1483 = vmatprep.mubr.msk.f32.mxu0 %vm428_vm0, %v384_v50  ;;  %v757_v50 = vunpack.c.0.s8 %v741_v34  ;;  %v762_v19 = vunpack.c.0.s8 %v746_v7  ;;  %v410_v7 = vld [vmem:[%s2157_s29 + $0x30] sm:$0xff] }
  0x73   : > { %v1605_v9 = vpack.c.bf16 %v411_v8, %v410_v7  ;;  %v415_v7 = vld [vmem:[%s2157_s29 + $0x58] sm:$0xff] }
  0x74   : > { %vm2082_vm3 = vcmp.ne.s32.totalorder %v757_v50, 0  ;;  %vm778_vm12 = vcmp.ne.s32.totalorder %v762_v19, 0  ;;  %v753_v50 = vsel %vm737_vm2, 16843009, %v1827_v58 }
  0x75   : > { %1484 = vmatmul.mubr.msk.f32.gmra.mrb[12].mxu0 %vm428_vm0, %v385_v53  ;;  %v744_v53 = vsel %vm2050_vm13, 16843009, %v1827_v58  ;;  %vm735_vm13 = vnez %v717_v24 }
  0x76   : > { %1486 = vmatprep.mubr.msk.f32.mxu0 %vm428_vm0, %v386_v54  ;;  %v760_v4 = vunpack.c.0.s8 %v744_v53  ;;  %v751_v41 = vsel %vm735_vm13, 16843009, %v1827_v58 }
  0x77   : > { %v767_v46 = vunpack.c.0.s8 %v751_v41 }
  0x78   : > { %vm776_vm8 = vcmp.ne.s32.totalorder %v760_v4, 0  ;;  %v408_v4 = vld [vmem:[%s2157_s29 + $0x20] sm:$0xff] }
  0x79   : > { %1487 = vmatmul.mubr.msk.f32.gmra.mrb[14].mxu0 %vm428_vm0, %v387_v56  ;;  %v709_v56 = vpack.c.b8 %v708_v42, %v708_v42 }
  0x7b   : > { %vm2092_vm5 = vnez %v709_v56 }
  0x7c   : > { %v747_v21 = vsel %vm2092_vm5, 16843009, %v1827_v58  ;;  %vm783_vm5 = vcmp.ne.s32.totalorder %v767_v46, 0 }
  0x7d   : > { %v763_v29 = vunpack.c.0.s8 %v747_v21 }
 0x130   : > { %v1467_v40 = vpop.f32.mrb[0].mxu0 }
 0x131   : > { %v591_v45 = vpop.f32.mrb[1].mxu0  ;;  %v2078_v0 = vsel %vm2059_vm14, -1e+09, %v1467_v40  ;;  %vm736_vm14 = vnez %v719_v25 }
 0x132   : > { %v2057_v48 = vsel %vm2037_vm11, -1e+09, %v591_v45  ;;  %vm777_vm11 = vcmp.ne.s32.totalorder %v761_v18, 0  ;;  %v752_v42 = vsel %vm736_vm14, 16843009, %v1827_v58 }
 0x133   : > { %802 = vmax.xlane.f32.xlu0 %v2057_v48  ;;  %v768_v47 = vunpack.c.0.s8 %v752_v42 }
 0x134   : > { %v1470_v54 = vpop.f32.mrb[2].mxu0 }
 0x135   : > { %v601_v60 = vpop.f32.mrb[3].mxu0  ;;  %v2103_v16 = vsel %vm2082_vm3, -1e+09, %v1470_v54  ;;  %vm781_vm3 = vcmp.ne.s32.totalorder %v765_v38, 0  ;;  %vm784_vm6 = vcmp.ne.s32.totalorder %v768_v47, 0  ;;  %v769_v54 = vunpack.c.0.s8 %v753_v50 }
 0x136   : > { %v2080_v1 = vsel %vm772_vm15, -1e+09, %v601_v60  ;;  %vm779_vm15 = vcmp.ne.s32.totalorder %v763_v29, 0  ;;  %v404_v60 = vld [vmem:[%s2157_s29] sm:$0xff] }
 0x137   : > { %804 = vmax.xlane.f32.xlu0 %v2078_v0  ;;  %806 = vmax.xlane.f32.xlu1 %v2080_v1  ;;  %v1593_v63 = vpack.c.bf16 %v405_v61, %v404_v60 }
 0x138   : > { %v1473_v6 = vpop.f32.mrb[4].mxu0 }
 0x139   : > { %v611_v11 = vpop.f32.mrb[5].mxu0  ;;  %v2115_v27 = vsel %vm775_vm7, -1e+09, %v1473_v6  ;;  %vm785_vm7 = vcmp.ne.s32.totalorder %v769_v54, 0  ;;  %1594 = vmatprep.subr.bf16.mxu1 %v1593_v63  ;;  %v1601_v6 = vpack.c.bf16 %v409_v5, %v408_v4 }
 0x13a   : > { %v2105_v17 = vsel %vm774_vm4, -1e+09, %v611_v11  ;;  %vm782_vm4 = vcmp.ne.s32.totalorder %v766_v39, 0  ;;  %1596 = vmatpush3.bf16.msra.mxu1 %v1593_v63 }
 0x13b   : > { %808 = vmax.xlane.f32.xlu1 %v2103_v16  ;;  %810 = vmax.xlane.f32.xlu0 %v2105_v17 }
 0x13c   : > { %v1476_v20 = vpop.f32.mrb[6].mxu0  ;;  %1598 = vmatprep.subr.bf16.mxu1 %v1597_v3 }
 0x13d   : > { %v621_v23 = vpop.f32.mrb[7].mxu0  ;;  %v2123_v36 = vsel %vm777_vm11, -1e+09, %v1476_v20 }
 0x13e   : > { %v2117_v28 = vsel %vm776_vm8, -1e+09, %v621_v23  ;;  %1600 = vmatpush3.bf16.msra.mxu1 %v1597_v3 }
 0x13f   : > { %812 = vmax.xlane.f32.xlu1 %v2115_v27  ;;  %814 = vmax.xlane.f32.xlu0 %v2117_v28 }
 0x140   : > { %v1479_v31 = vpop.f32.mrb[8].mxu0  ;;  %1602 = vmatprep.subr.bf16.mxu1 %v1601_v6 }
 0x141   : > { %v631_v34 = vpop.f32.mrb[9].mxu0  ;;  %v2131_v44 = vsel %vm779_vm15, -1e+09, %v1479_v31 }
 0x142   : > { %v2125_v37 = vsel %vm778_vm12, -1e+09, %v631_v34  ;;  %1604 = vmatpush3.bf16.msra.mxu1 %v1601_v6 }
 0x143   : > { %816 = vmax.xlane.f32.xlu1 %v2123_v36  ;;  %818 = vmax.xlane.f32.xlu0 %v2125_v37 }
 0x144   : > { %v1482_v40 = vpop.f32.mrb[10].mxu0  ;;  %1606 = vmatprep.subr.bf16.mxu1 %v1605_v9 }
 0x145   : > { %v641_v43 = vpop.f32.mrb[11].mxu0  ;;  %v2138_v52 = vsel %vm781_vm3, -1e+09, %v1482_v40 }
 0x146   : > { %v2133_v45 = vsel %vm780_vm1, -1e+09, %v641_v43  ;;  %1608 = vmatpush3.bf16.msra.mxu1 %v1605_v9 }
 0x147   : > { %820 = vmax.xlane.f32.xlu1 %v2131_v44  ;;  %822 = vmax.xlane.f32.xlu0 %v2133_v45 }
 0x148   : > { %v1485_v49 = vpop.f32.mrb[12].mxu0 }
 0x149   : > { %v651_v51 = vpop.f32.mrb[13].mxu0  ;;  %v2144_v57 = vsel %vm783_vm5, -1e+09, %v1485_v49 }
 0x14a   : > { %v2140_v53 = vsel %vm782_vm4, -1e+09, %v651_v51 }
 0x14b   : > { %824 = vmax.xlane.f32.xlu1 %v2138_v52  ;;  %826 = vmax.xlane.f32.xlu0 %v2140_v53 }
 0x14c   : > { %v1488_v55 = vpop.f32.mrb[14].mxu0 }
 0x14d   : > { %v661_v56 = vpop.f32.mrb[15].mxu0  ;;  %v2150_v58 = vsel %vm785_vm7, -1e+09, %v1488_v55 }
 0x14e   : > { %v2146_v59 = vsel %vm784_vm6, -1e+09, %v661_v56 }
 0x14f   : > { %828 = vmax.xlane.f32.xlu1 %v2144_v57  ;;  %830 = vmax.xlane.f32.xlu0 %v2146_v59 }
 0x153   : > { %832 = vmax.xlane.f32.xlu1 %v2150_v58 }
 0x1c0   : > { %v803_v10 = vpop.xlane.xlu0 %802 }
 0x1c1   : > { %v834_v11 = vsub.f32 %v2057_v48, %v803_v10 }
 0x1c3   : > { %v850_v12 = vmul.f32 1.442695, %v834_v11 }
 0x1c4   : > { %v805_v13 = vpop.xlane.xlu0 %804  ;;  %v807_v14 = vpop.xlane.xlu1 %806 }
 0x1c5   : > { %1683 = vpow2.f32 %v850_v12  ;;  %v835_v15 = vsub.f32 %v2078_v0, %v805_v13  ;;  %v836_v18 = vsub.f32 %v2080_v1, %v807_v14  ;;  %v417_v12 = vld [vmem:[%s2157_s29 + $0x68] sm:$0xff] }
 0x1c7   : > { %v852_v19 = vmul.f32 1.442695, %v835_v15  ;;  %v854_v20 = vmul.f32 1.442695, %v836_v18  ;;  %v418_v18 = vld [vmem:[%s2157_s29 + $0x70] sm:$0xff] }
 0x1c8   : > { %v809_v21 = vpop.xlane.xlu1 %808  ;;  %v811_v22 = vpop.xlane.xlu0 %810 }
 0x1c9   : > { %1685 = vpow2.f32 %v852_v19  ;;  %v837_v23 = vsub.f32 %v2103_v16, %v809_v21  ;;  %v838_v24 = vsub.f32 %v2105_v17, %v811_v22  ;;  %v419_v19 = vld [vmem:[%s2157_s29 + $0x78] sm:$0xff] }
 0x1ca   : > { %1687 = vpow2.f32 %v854_v20  ;;  %v1621_v20 = vpack.c.bf16 %v419_v19, %v418_v18 }
 0x1cb   : > { %v856_v25 = vmul.f32 1.442695, %v837_v23  ;;  %v858_v48 = vmul.f32 1.442695, %v838_v24 }
 0x1cc   : > { %v813_v26 = vpop.xlane.xlu1 %812  ;;  %v815_v29 = vpop.xlane.xlu0 %814 }
 0x1cd   : > { %1689 = vpow2.f32 %v856_v25  ;;  %v839_v30 = vsub.f32 %v2115_v27, %v813_v26  ;;  %v840_v0 = vsub.f32 %v2117_v28, %v815_v29 }
 0x1ce   : > { %1691 = vpow2.f32 %v858_v48 }
 0x1cf   : > { %v2174_v1 = vpop.eup %1683  ;;  %v860_v31 = vmul.f32 1.442695, %v839_v30  ;;  %v862_v32 = vmul.f32 1.442695, %v840_v0 }
 0x1d0   : > { %v817_v33 = vpop.xlane.xlu1 %816  ;;  %v819_v34 = vpop.xlane.xlu0 %818  ;;  %882 = vadd.xlane.f32.xlu0 %v2174_v1 }
 0x1d1   : > { %1693 = vpow2.f32 %v860_v31  ;;  %v841_v16 = vsub.f32 %v2123_v36, %v817_v33  ;;  %v842_v17 = vsub.f32 %v2125_v37, %v819_v34 }
 0x1d2   : > { %1695 = vpow2.f32 %v862_v32 }
 0x1d3   : > { %v2179_v35 = vpop.eup %1685  ;;  %v864_v27 = vmul.f32 1.442695, %v841_v16  ;;  %v866_v38 = vmul.f32 1.442695, %v842_v17 }
 0x1d4   : > { %v2181_v28 = vpop.eup %1687  ;;  %v821_v39 = vpop.xlane.xlu1 %820  ;;  %884 = vadd.xlane.f32.xlu1 %v2179_v35 }
 0x1d5   : > { %v823_v40 = vpop.xlane.xlu0 %822  ;;  %1697 = vpow2.f32 %v864_v27  ;;  %v843_v41 = vsub.f32 %v2131_v44, %v821_v39  ;;  %886 = vadd.xlane.f32.xlu0 %v2181_v28 }
 0x1d6   : > { %v844_v42 = vsub.f32 %v2133_v45, %v823_v40  ;;  %1699 = vpow2.f32 %v866_v38 }
 0x1d7   : > { %v2187_v36 = vpop.eup %1689  ;;  %v868_v37 = vmul.f32 1.442695, %v843_v41 }
 0x1d8   : > { %v870_v43 = vmul.f32 1.442695, %v844_v42  ;;  %v2189_v46 = vpop.eup %1691  ;;  %v825_v47 = vpop.xlane.xlu1 %824  ;;  %888 = vadd.xlane.f32.xlu1 %v2187_v36 }
 0x1d9   : > { %v827_v49 = vpop.xlane.xlu0 %826  ;;  %1701 = vpow2.f32 %v868_v37  ;;  %v845_v50 = vsub.f32 %v2138_v52, %v825_v47  ;;  %890 = vadd.xlane.f32.xlu0 %v2189_v46 }
 0x1da   : > { %v846_v44 = vsub.f32 %v2140_v53, %v827_v49  ;;  %1703 = vpow2.f32 %v870_v43  ;;  %v412_v53 = vld [vmem:[%s2157_s29 + $0x40] sm:$0xff] }
 0x1db   : > { %v2195_v45 = vpop.eup %1693  ;;  %v872_v51 = vmul.f32 1.442695, %v845_v50  ;;  %v1609_v63 = vpack.c.bf16 %v413_v62, %v412_v53 }
 0x1dc   : > { %v874_v54 = vmul.f32 1.442695, %v846_v44  ;;  %v2197_v55 = vpop.eup %1695  ;;  %v829_v56 = vpop.xlane.xlu1 %828  ;;  %892 = vadd.xlane.f32.xlu1 %v2195_v45 }
 0x1dd   : > { %v831_v60 = vpop.xlane.xlu0 %830  ;;  %1705 = vpow2.f32 %v872_v51  ;;  %v847_v61 = vsub.f32 %v2144_v57, %v829_v56  ;;  %894 = vadd.xlane.f32.xlu0 %v2197_v55  ;;  %1610 = vmatprep.subr.bf16.mxu1 %v1609_v63 }
 0x1de   : > { %v848_v52 = vsub.f32 %v2146_v59, %v831_v60  ;;  %1707 = vpow2.f32 %v874_v54  ;;  %1612 = vmatpush3.bf16.msra.mxu1 %v1609_v63  ;;  %v414_v59 = vld [vmem:[%s2157_s29 + $0x50] sm:$0xff] }
 0x1df   : > { %v2205_v2 = vpop.eup %1697  ;;  %v876_v3 = vmul.f32 1.442695, %v847_v61  ;;  %v1613_v8 = vpack.c.bf16 %v415_v7, %v414_v59 }
 0x1e0   : > { %v878_v4 = vmul.f32 1.442695, %v848_v52  ;;  %v2207_v5 = vpop.eup %1699  ;;  %896 = vadd.xlane.f32.xlu1 %v2205_v2  ;;  %v833_v6 = vpop.xlane.xlu1 %832 }
 0x1e1   : > { %1709 = vpow2.f32 %v876_v3  ;;  %v849_v57 = vsub.f32 %v2150_v58, %v833_v6  ;;  %898 = vadd.xlane.f32.xlu0 %v2207_v5  ;;  %1614 = vmatprep.subr.bf16.mxu1 %v1613_v8  ;;  %v416_v58 = vld [vmem:[%s2157_s29 + $0x60] sm:$0xff] }
 0x1e2   : > { %1711 = vpow2.f32 %v878_v4  ;;  %1616 = vmatpush3.bf16.msra.mxu1 %v1613_v8  ;;  %v1617_v13 = vpack.c.bf16 %v417_v12, %v416_v58 }
 0x1e3   : > { %v2214_v9 = vpop.eup %1701  ;;  %v880_v10 = vmul.f32 1.442695, %v849_v57 }
 0x1e4   : > { %v2216_v11 = vpop.eup %1703  ;;  %900 = vadd.xlane.f32.xlu1 %v2214_v9  ;;  %1618 = vmatprep.subr.bf16.mxu1 %v1617_v13 }
 0x1e5   : > { %1713 = vpow2.f32 %v880_v10  ;;  %902 = vadd.xlane.f32.xlu0 %v2216_v11 }
 0x1e6   : > { %1620 = vmatpush3.bf16.msra.mxu1 %v1617_v13 }
 0x1e7   : > { %v2222_v14 = vpop.eup %1705  ;;  %1622 = vmatprep.subr.bf16.mxu1 %v1621_v20 }
 0x1e8   : > { %v2224_v15 = vpop.eup %1707  ;;  %904 = vadd.xlane.f32.xlu1 %v2222_v14 }
 0x1e9   : > { %906 = vadd.xlane.f32.xlu0 %v2224_v15 }
 0x1ea   : > { %1624 = vmatpush3.bf16.msra.mxu1 %v1621_v20 }
 0x1eb   : > { %v2230_v21 = vpop.eup %1709 }
 0x1ec   : > { %v2232_v22 = vpop.eup %1711  ;;  %908 = vadd.xlane.f32.xlu1 %v2230_v21 }
 0x1ed   : > { %910 = vadd.xlane.f32.xlu0 %v2232_v22 }
 0x1ef   : > { %v2236_v23 = vpop.eup %1713 }
 0x1f0   : > { %912 = vadd.xlane.f32.xlu1 %v2236_v23 }
 0x25d   : > { %v883_v24 = vpop.xlane.xlu0 %882 }
 0x25e   : > { %1715 = vrcp.f32 %v883_v24 }
 0x261   : > { %v885_v25 = vpop.xlane.xlu1 %884 }
 0x262   : > { %1717 = vrcp.f32 %v885_v25  ;;  %v887_v48 = vpop.xlane.xlu0 %886 }
 0x263   : > { %1719 = vrcp.f32 %v887_v48 }
 0x265   : > { %v889_v26 = vpop.xlane.xlu1 %888 }
 0x266   : > { %1721 = vrcp.f32 %v889_v26  ;;  %v891_v29 = vpop.xlane.xlu0 %890 }
 0x267   : > { %1723 = vrcp.f32 %v891_v29 }
 0x268   : > { %v1716_v30 = vpop.eup %1715 }
 0x269   : > { %v893_v0 = vpop.xlane.xlu1 %892  ;;  %v930_v31 = vmul.f32 %v1716_v30, %v2174_v1 }
 0x26a   : > { %1725 = vrcp.f32 %v893_v0  ;;  %v895_v32 = vpop.xlane.xlu0 %894 }
 0x26b   : > { %1727 = vrcp.f32 %v895_v32  ;;  %946 = vst [vmem:[%s2243_s10] sm:$0xff] %v930_v31  ;;  %1521 = vmatprep.mubr.f32.mxu1 %v930_v31 }
 0x26c   : > { %v1718_v33 = vpop.eup %1717 }
 0x26d   : > { %v1720_v34 = vpop.eup %1719  ;;  %v897_v16 = vpop.xlane.xlu1 %896  ;;  %v931_v17 = vmul.f32 %v1718_v33, %v2179_v35 }
 0x26e   : > { %1729 = vrcp.f32 %v897_v16  ;;  %v899_v27 = vpop.xlane.xlu0 %898  ;;  %v932_v1 = vmul.f32 %v1720_v34, %v2181_v28 }
 0x26f   : > { %1731 = vrcp.f32 %v899_v27  ;;  %947 = vst [vmem:[%s2243_s10 + $0x8] sm:$0xff] %v931_v17  ;;  %1522 = vmatmul.mubr.f32.vlgmr.msra.gmra.mrb[0].mxu1 %v931_v17 }
 0x270   : > { %v1722_v38 = vpop.eup %1721  ;;  %948 = vst [vmem:[%s2243_s10 + $0x10] sm:$0xff] %v932_v1  ;;  %1524 = vmatprep.mubr.f32.mxu1 %v932_v1 }
 0x271   : > { %v1724_v39 = vpop.eup %1723  ;;  %v901_v40 = vpop.xlane.xlu1 %900  ;;  %v933_v41 = vmul.f32 %v1722_v38, %v2187_v36 }
 0x272   : > { %1733 = vrcp.f32 %v901_v40  ;;  %v903_v42 = vpop.xlane.xlu0 %902  ;;  %v934_v35 = vmul.f32 %v1724_v39, %v2189_v46 }
 0x273   : > { %1735 = vrcp.f32 %v903_v42  ;;  %949 = vst [vmem:[%s2243_s10 + $0x18] sm:$0xff] %v933_v41  ;;  %1525 = vmatmul.mubr.f32.gmra.mrb[2].mxu1 %v933_v41 }
 0x274   : > { %v1726_v28 = vpop.eup %1725  ;;  %950 = vst [vmem:[%s2243_s10 + $0x20] sm:$0xff] %v934_v35  ;;  %1527 = vmatprep.mubr.f32.mxu1 %v934_v35 }
 0x275   : > { %v1728_v37 = vpop.eup %1727  ;;  %v905_v43 = vpop.xlane.xlu1 %904  ;;  %v935_v47 = vmul.f32 %v1726_v28, %v2195_v45 }
 0x276   : > { %1737 = vrcp.f32 %v905_v43  ;;  %v907_v49 = vpop.xlane.xlu0 %906  ;;  %v936_v36 = vmul.f32 %v1728_v37, %v2197_v55 }
 0x277   : > { %1739 = vrcp.f32 %v907_v49  ;;  %951 = vst [vmem:[%s2243_s10 + $0x28] sm:$0xff] %v935_v47  ;;  %1528 = vmatmul.mubr.f32.gmra.mrb[4].mxu1 %v935_v47 }
 0x278   : > { %v1730_v46 = vpop.eup %1729  ;;  %952 = vst [vmem:[%s2243_s10 + $0x30] sm:$0xff] %v936_v36  ;;  %1530 = vmatprep.mubr.f32.mxu1 %v936_v36 }
 0x279   : > { %v1732_v50 = vpop.eup %1731  ;;  %v909_v44 = vpop.xlane.xlu1 %908  ;;  %v937_v51 = vmul.f32 %v1730_v46, %v2205_v2 }
 0x27a   : > { %1741 = vrcp.f32 %v909_v44  ;;  %v911_v54 = vpop.xlane.xlu0 %910  ;;  %v938_v45 = vmul.f32 %v1732_v50, %v2207_v5 }
 0x27b   : > { %1743 = vrcp.f32 %v911_v54  ;;  %953 = vst [vmem:[%s2243_s10 + $0x38] sm:$0xff] %v937_v51  ;;  %1531 = vmatmul.mubr.f32.gmra.mrb[6].mxu1 %v937_v51 }
 0x27c   : > { %v1734_v55 = vpop.eup %1733  ;;  %954 = vst [vmem:[%s2243_s10 + $0x40] sm:$0xff] %v938_v45  ;;  %1533 = vmatprep.mubr.f32.mxu1 %v938_v45 }
 0x27d   : > { %v1736_v56 = vpop.eup %1735  ;;  %v913_v60 = vpop.xlane.xlu1 %912  ;;  %v939_v61 = vmul.f32 %v1734_v55, %v2214_v9 }
 0x27e   : > { %1745 = vrcp.f32 %v913_v60  ;;  %v940_v52 = vmul.f32 %v1736_v56, %v2216_v11 }
 0x27f   : > { %955 = vst [vmem:[%s2243_s10 + $0x48] sm:$0xff] %v939_v61  ;;  %1534 = vmatmul.mubr.f32.gmra.mrb[8].mxu1 %v939_v61 }
 0x280   : > { %v1738_v53 = vpop.eup %1737  ;;  %956 = vst [vmem:[%s2243_s10 + $0x50] sm:$0xff] %v940_v52  ;;  %1536 = vmatprep.mubr.f32.mxu1 %v940_v52 }
 0x281   : > { %v1740_v62 = vpop.eup %1739  ;;  %v941_v63 = vmul.f32 %v1738_v53, %v2222_v14 }
 0x282   : > { %v942_v2 = vmul.f32 %v1740_v62, %v2224_v15 }
 0x283   : > { %957 = vst [vmem:[%s2243_s10 + $0x58] sm:$0xff] %v941_v63  ;;  %1537 = vmatmul.mubr.f32.gmra.mrb[10].mxu1 %v941_v63 }
 0x284   : > { %v1742_v3 = vpop.eup %1741  ;;  %958 = vst [vmem:[%s2243_s10 + $0x60] sm:$0xff] %v942_v2  ;;  %1539 = vmatprep.mubr.f32.mxu1 %v942_v2 }
 0x285   : > { %v1744_v4 = vpop.eup %1743  ;;  %v943_v5 = vmul.f32 %v1742_v3, %v2230_v21 }
 0x286   : > { %v944_v6 = vmul.f32 %v1744_v4, %v2232_v22 }
 0x287   : > { %959 = vst [vmem:[%s2243_s10 + $0x68] sm:$0xff] %v943_v5  ;;  %1540 = vmatmul.mubr.f32.gmra.mrb[12].mxu1 %v943_v5 }
 0x288   : > { %v1746_v57 = vpop.eup %1745  ;;  %960 = vst [vmem:[%s2243_s10 + $0x70] sm:$0xff] %v944_v6  ;;  %1542 = vmatprep.mubr.f32.mxu1 %v944_v6 }
 0x289   : > { %v945_v59 = vmul.f32 %v1746_v57, %v2236_v23 }
 0x28b   : > { %961 = vst [vmem:[%s2243_s10 + $0x78] sm:$0xff] %v945_v59  ;;  %1543 = vmatmul.mubr.f32.gmra.mrb[14].mxu1 %v945_v59 }
 0x28c   : > { %1760 = shalt.err (!%p1757_p5)
}
 0x28d   : > { %s1761_s27 = scalar_lea.hbm %s2281_s15, 2048  ;;  %s1765_s9 = scalar_lea.hbm %s2375_s4, 8192 }
 0x28e   : > { %p1762_p6 = scmp.ne.s32.totalorder %s2281_s15, %s1761_s27  ;;  %p1766_p10 = scmp.lt.u32.totalorder %s2281_s15, %s2375_s4 }
 0x28f   : > { %p1767_p11 = scmp.lt.u32.totalorder %s1765_s9, %s1761_s27  ;;  %p1769_p13 = scmp.lt.u32.totalorder %s1761_s27, %s2281_s15 }
 0x290   : > { %p1763_p7 = pnand %p1762_p6, %p1901_p4 }
 0x291   : > { %p1768_p12 = por %p1767_p11, %p1766_p10 }
 0x292   : > { %p1764_p9 = pneg %p1763_p7 }
 0x293   : > { %p1770_p0 = por %p1769_p13, %p1768_p12 }
 0x295   : > { %p1771_p1 = pnand %p1770_p0, %p1764_p9 }
 0x297   : > { %1774 = shalt.err (!%p1771_p1)
}
 0x298   : > { %s1829_s13 = smov 128   ;;  %s1830_s14 = smov 8  }
 0x299   : > { %1625 = dma.vmem_to_hbm [thread:$0]  (%p1901_p4), %s2283_s12, 2048, %s2281_s15, %s2287_s16, %s1829_s13, %s1829_s13, %s1830_s14  }
 0x29a   : > { %s2315_s24 = scalar_lea.vmem %s2376_s5, %s1921_s8 }
 0x342   : > { %v1523_v7 = vpop.f32.mrb[0].mxu1 }
 0x343   : > { %1108 = vst.msk [vmem:[%s2315_s24 + $0x8] sm:$0xff] %vm428_vm0, %v1523_v7  ;;  %v1028_v8 = vpop.f32.mrb[1].mxu1 }
 0x344   : > { %1107 = vst.msk [vmem:[%s2315_s24] sm:$0xff] %vm428_vm0, %v1028_v8 }
 0x346   : > { %v1526_v9 = vpop.f32.mrb[2].mxu1 }
 0x347   : > { %1110 = vst.msk [vmem:[%s2315_s24 + $0x18] sm:$0xff] %vm428_vm0, %v1526_v9  ;;  %v1038_v10 = vpop.f32.mrb[3].mxu1 }
 0x348   : > { %1109 = vst.msk [vmem:[%s2315_s24 + $0x10] sm:$0xff] %vm428_vm0, %v1038_v10 }
 0x34a   : > { %v1529_v11 = vpop.f32.mrb[4].mxu1 }
 0x34b   : > { %1112 = vst.msk [vmem:[%s2315_s24 + $0x28] sm:$0xff] %vm428_vm0, %v1529_v11  ;;  %v1048_v58 = vpop.f32.mrb[5].mxu1 }
 0x34c   : > { %1111 = vst.msk [vmem:[%s2315_s24 + $0x20] sm:$0xff] %vm428_vm0, %v1048_v58 }
 0x34e   : > { %v1532_v12 = vpop.f32.mrb[6].mxu1 }
 0x34f   : > { %1114 = vst.msk [vmem:[%s2315_s24 + $0x38] sm:$0xff] %vm428_vm0, %v1532_v12  ;;  %v1058_v13 = vpop.f32.mrb[7].mxu1 }
 0x350   : > { %1113 = vst.msk [vmem:[%s2315_s24 + $0x30] sm:$0xff] %vm428_vm0, %v1058_v13 }
 0x352   : > { %v1535_v14 = vpop.f32.mrb[8].mxu1 }
 0x353   : > { %1116 = vst.msk [vmem:[%s2315_s24 + $0x48] sm:$0xff] %vm428_vm0, %v1535_v14  ;;  %v1068_v15 = vpop.f32.mrb[9].mxu1 }
 0x354   : > { %1115 = vst.msk [vmem:[%s2315_s24 + $0x40] sm:$0xff] %vm428_vm0, %v1068_v15 }
 0x356   : > { %v1538_v18 = vpop.f32.mrb[10].mxu1 }
 0x357   : > { %1118 = vst.msk [vmem:[%s2315_s24 + $0x58] sm:$0xff] %vm428_vm0, %v1538_v18  ;;  %v1078_v19 = vpop.f32.mrb[11].mxu1 }
 0x358   : > { %1117 = vst.msk [vmem:[%s2315_s24 + $0x50] sm:$0xff] %vm428_vm0, %v1078_v19 }
 0x35a   : > { %v1541_v20 = vpop.f32.mrb[12].mxu1 }
 0x35b   : > { %1120 = vst.msk [vmem:[%s2315_s24 + $0x68] sm:$0xff] %vm428_vm0, %v1541_v20  ;;  %v1088_v21 = vpop.f32.mrb[13].mxu1 }
 0x35c   : > { %1119 = vst.msk [vmem:[%s2315_s24 + $0x60] sm:$0xff] %vm428_vm0, %v1088_v21 }
 0x35e   : > { %v1544_v22 = vpop.f32.mrb[14].mxu1 }
 0x35f   : > { %1122 = vst.msk [vmem:[%s2315_s24 + $0x78] sm:$0xff] %vm428_vm0, %v1544_v22  ;;  %v1098_v23 = vpop.f32.mrb[15].mxu1 }
 0x360   : > { %1121 = vst.msk [vmem:[%s2315_s24 + $0x70] sm:$0xff] %vm428_vm0, %v1098_v23 }
 0x361 PF: > { %p1631_p4 = scmp.ge.s32.totalorder %s1825_s23, 2  ;;  %s1167_s28 = sand.u32 1, %s1805_s18  }
 0x362   : > { %s1168_s8 = scalar_lea.sflag [#allocation3], %s1167_s28 }
 0x363   : > { %p1628_p2 = pnand %p1631_p4, %p1908_p8 }
 0x365   : > { %1800 = dma.done.wait (!%p1628_p2), %s1168_s8, 2048  }
 0x366   : > { %1802 = vsyncadd (!%p1628_p2), %s1168_s8, 4294965248  ;;  %s19_s23 = sadd.s32 1, %s1825_s23   ;;  %s2397_s18 = smov %s1809_s19 }
 0x367   : > { %p16_p3 = scmp.ge.s32.totalorder %s19_s23, 6   ;;  %s2398_s19 = smov %s1813_s20 }
 0x368   : > { %s2399_s20 = smov %s1914_s6  ;;  %s2400_s21 = smov %s1821_s22 }
 0x369   : > { %s2401_s22 = smov %s2403_s26  ;;  %18 = sbr.rel (!%p16_p3) target bundleno = 4 (0x4), region = 92 }
 0x370   :  { %1185 = vsyncpa [#allocation3], 1 }
 0x371   :  { %1187 = vsyncpa [#allocation3 + $0x1], 1 }

</bundles_post_ra>
